<compile_context>
chip_gen: v7x
topology: tpu7x:2x2x1
jax: 0.10.0
libtpu: 0.0.40
codegen_flags: <defaults>
</compile_context>

<pallas_src>
import functools

import jax
import jax.numpy as jnp
from jax.experimental import pallas as pl
from jax.experimental.pallas import tpu as pltpu


# ----------------------------- config ---------------------------------------
class Config:
    n_vocab = 50
    embed = 32
    num_filters = 8
    filter_sizes = (2, 3, 4)
    num_classes = 5
    dropout = 0.5          # eval mode -> identity
    seq_len = 16
    batch = 2


# ----------------------------- kernel ---------------------------------------
def _textcnn_kernel(filter_sizes, B, S, F, C, V,
                    tok_ref, wfold_ref, cb_ref, fcw_ref, fcb_ref, out_ref):
    """one-hot @ W_fold (embed+conv fused) -> roll/add taps -> mask/max -> bias+ReLU -> FC."""
    BS = B * S
    nF = len(filter_sizes) * F           # 24: all filter banks side-by-side
    max_k = max(filter_sizes)

    # ---- embedding + conv in ONE MXU matmul (table folded into W_fold) ------
    # TODO(synk): at realistic vocab (30-50k) replace the one-hot matmul with a
    # DMA row-gather (scalar-prefetch tokens + pl.Element index_map on the table).
    tok = tok_ref[...]                                            # (BS, 1) int32
    vocab_iota = jax.lax.broadcasted_iota(jnp.int32, (BS, V), 1)  # (BS, V)
    onehot = (vocab_iota == tok).astype(jnp.float32)              # exact 0/1
    # p[:, i*nF:(i+1)*nF] = tap-i contribution of every filter bank at every
    # flat token row.  Missing taps (i >= k_j) are zero columns in W_fold.
    p = jnp.dot(onehot, wfold_ref[...],
                preferred_element_type=jnp.float32)               # (BS, max_k*nF)

    # ---- build ALL conv accumulators side-by-side as one (BS, nF) slab ------
    # rolled slice i: row n holds the tap-i term evaluated at token row n+i
    # (XLU sublane rotate + VPU add; wrapped rows are masked below).
    slab = p[:, 0:nF]
    for i in range(1, max_k):
        shifted = pltpu.roll(p[:, i * nF:(i + 1) * nF], shift=BS - i, axis=0)
        slab = slab + shifted

    conv = slab.reshape(B, S, nF)                                 # ONE reshape

    # ---- single mask with per-column valid-length threshold ------------------
    # band j (columns [j*F,(j+1)*F)) is valid for t < S - k_j + 1; rows beyond
    # that (incl. wrap-around across sequence/batch boundaries) get -1e30.
    t_idx = jax.lax.broadcasted_iota(jnp.int32, (B, S, nF), 1)
    col = jax.lax.broadcasted_iota(jnp.int32, (B, S, nF), 2)
    L = jnp.full((B, S, nF), S - filter_sizes[-1] + 1, jnp.int32)
    for j in range(len(filter_sizes) - 2, -1, -1):
        L = jnp.where(col < (j + 1) * F, S - filter_sizes[j] + 1, L)
    conv = jnp.where(t_idx < L, conv, jnp.float32(-1e30))

    pooled = jnp.max(conv, axis=1)                                # ONE max: (B, nF)

    # bias + ReLU hoisted past the max (bias constant over t, ReLU monotone).
    feats = jnp.maximum(pooled + cb_ref[...], 0.0)
    # dropout in eval mode is identity (no-op)
    out_ref[...] = (jnp.dot(feats, fcw_ref[...],
                            preferred_element_type=jnp.float32)
                    + fcb_ref[...])


# ----------------------------- wrapper ---------------------------------------
def textcnn_forward(tokens, embed_table, conv_ws, conv_bs, fc_w, fc_b, cfg):
    """tokens: (B, S) int32.  Returns (B, num_classes) float32."""
    B, S = tokens.shape
    E, F, C, V = cfg.embed, cfg.num_filters, cfg.num_classes, cfg.n_vocab
    fs = tuple(cfg.filter_sizes)
    max_k = max(fs)
    nF = len(fs) * F
    # roll+mask pooling / bias+ReLU hoist need >= 1 valid window per sequence.
    assert S >= max_k, "seq_len must be >= max(filter_sizes)"

    # ---- weight-only preprocessing (constant-foldable; no activation compute) ----
    # Tap-major conv weights with zero columns for missing taps:
    #   W_all[:, i*nF + j*F : i*nF + (j+1)*F] = conv_ws[j][i]   (0 if i >= k_j)
    blocks = []
    for i in range(max_k):
        per_bank = [conv_ws[j][i] if i < k else jnp.zeros((E, F), jnp.float32)
                    for j, k in enumerate(fs)]
        blocks.append(jnp.concatenate(per_bank, axis=1))          # (E, nF)
    w_all = jnp.concatenate(blocks, axis=1)                       # (E, max_k*nF)
    # Fold the embedding table into the conv weights (one fewer MXU pass in-kernel);
    # HIGHEST precision so exact-lookup semantics are preserved through the fold.
    w_fold = jnp.dot(embed_table.astype(jnp.float32), w_all,
                     precision=jax.lax.Precision.HIGHEST)         # (V, max_k*nF)

    cb_cat = jnp.concatenate(conv_bs, axis=0).reshape(1, nF)
    tok2d = tokens.reshape(B * S, 1).astype(jnp.int32)

    kernel = functools.partial(_textcnn_kernel, fs, B, S, F, C, V)
    vmem_spec = pl.BlockSpec(memory_space=pltpu.MemorySpace.VMEM)

    # TODO(synk): at production B/S, tile the batch via a grid marked "parallel"
    # (megacore on v7x; size per-block VMEM for its 64 MiB), keep weight operands
    # VMEM-resident via constant index_maps, store MXU weights in bf16 on
    # v6e/v7x (keep VPU elementwise in f32 for v5e), and pad the logits store to
    # a lane-dense slab.  At B=2/S=16 one whole-array invocation is cheapest.
    out = pl.pallas_call(
        kernel,
        out_shape=jax.ShapeDtypeStruct((B, C), jnp.float32),
        in_specs=[vmem_spec] * 5,
        out_specs=vmem_spec,
    )(tok2d, w_fold, cb_cat, fc_w, fc_b)
    return out


# ------------------------- reference (plain JAX) -----------------------------
def textcnn_reference(tokens, embed_table, conv_ws, conv_bs, fc_w, fc_b, cfg):
    emb = jnp.take(embed_table, tokens, axis=0).astype(jnp.float32)  # (B, S, E)
    feats = []
    for k, w, b in zip(cfg.filter_sizes, conv_ws, conv_bs):
        B, S, E = emb.shape
        L = S - k + 1
        conv = jnp.zeros((B, L, cfg.num_filters), jnp.float32)
        for i in range(k):
            conv = conv + jnp.einsum("bse,ef->bsf", emb[:, i:i + L, :], w[i])
        conv = jax.nn.relu(conv + b[None, None, :])
        feats.append(jnp.max(conv, axis=1))
    cat = jnp.concatenate(feats, axis=1)
    return cat @ fc_w + fc_b


# ----------------------------- main ------------------------------------------
if __name__ == "__main__":
    cfg = Config()
    key = jax.random.PRNGKey(0)
    ks = jax.random.split(key, 4 + 2 * len(cfg.filter_sizes))

    # Deterministic synthetic parameters (shapes match the PyTorch module).
    embed_table = jax.random.normal(ks[0], (cfg.n_vocab, cfg.embed),
                                    dtype=jnp.float32) * 0.1

    conv_ws, conv_bs = [], []
    for i, k in enumerate(cfg.filter_sizes):
        # PyTorch Conv2d weight is (F, 1, k, E); stored here as (k, E, F).
        w = jax.random.normal(ks[1 + 2 * i], (k, cfg.embed, cfg.num_filters),
                              dtype=jnp.float32) * 0.1
        b = jax.random.normal(ks[2 + 2 * i], (cfg.num_filters,),
                              dtype=jnp.float32) * 0.1
        conv_ws.append(w)
        conv_bs.append(b)

    ntot = cfg.num_filters * len(cfg.filter_sizes)
    # PyTorch Linear weight is (C, ntot); stored here as its transpose (ntot, C).
    fc_w = jax.random.normal(ks[-2], (ntot, cfg.num_classes),
                             dtype=jnp.float32) * 0.1
    fc_b = jax.random.normal(ks[-1], (1, cfg.num_classes),
                             dtype=jnp.float32) * 0.1

    tokens = jax.random.randint(key, (cfg.batch, cfg.seq_len), 0, cfg.n_vocab,
                                dtype=jnp.int32)

    out = textcnn_forward(tokens, embed_table, conv_ws, conv_bs, fc_w, fc_b, cfg)
    out = jax.block_until_ready(out)

    ref = textcnn_reference(tokens, embed_table, conv_ws, conv_bs, fc_w, fc_b, cfg)
    assert out.shape == (cfg.batch, cfg.num_classes)
    assert jnp.allclose(out, ref, atol=1e-4, rtol=1e-4), "mismatch vs reference"

    print("KERNEL_OK")
</pallas_src>

<mosaic_0001>
module attributes {stable_mosaic.version = 11 : i64} {
  func.func @_textcnn_kernel(%arg0: memref<32x1xi32, #tpu.memory_space<vmem>>, %arg1: memref<50x96xf32, #tpu.memory_space<vmem>>, %arg2: memref<1x24xf32, #tpu.memory_space<vmem>>, %arg3: memref<24x5xf32, #tpu.memory_space<vmem>>, %arg4: memref<1x5xf32, #tpu.memory_space<vmem>>, %arg5: memref<2x5xf32, #tpu.memory_space<vmem>>) attributes {dimension_semantics = [], scalar_prefetch = 0 : i64, scratch_operands = 0 : i64, tpu.core_type = #tpu.core_type<tc>} {
    %c0 = arith.constant 0 : index
    %c0_0 = arith.constant 0 : index
    %0 = vector.load %arg0[%c0, %c0_0] : memref<32x1xi32, #tpu.memory_space<vmem>>, vector<32x1xi32>
    %1 = tpu.iota {dimensions = array<i32: 1>} : vector<32x50xi32>
    %2 = vector.broadcast %0 : vector<32x1xi32> to vector<32x50xi32>
    %3 = arith.cmpi eq, %1, %2 : vector<32x50xi32>
    %4 = arith.extui %3 : vector<32x50xi1> to vector<32x50xi32>
    %5 = arith.sitofp %4 : vector<32x50xi32> to vector<32x50xf32>
    %c0_1 = arith.constant 0 : index
    %c0_2 = arith.constant 0 : index
    %6 = vector.load %arg1[%c0_1, %c0_2] : memref<50x96xf32, #tpu.memory_space<vmem>>, vector<50x96xf32>
    %cst = arith.constant dense<0.000000e+00> : vector<32x96xf32>
    %7 = tpu.matmul %5, %6, %cst {dimension_numbers = #tpu.dot_dimension_numbers<[1], [0], [0], [1], [0, 0, 1, 1], [], []>} : vector<32x50xf32>, vector<50x96xf32>, vector<32x96xf32> -> vector<32x96xf32>
    %8 = vector.extract_strided_slice %7 {offsets = [0, 0], sizes = [32, 24], strides = [1, 1]} : vector<32x96xf32> to vector<32x24xf32>
    %9 = vector.extract_strided_slice %7 {offsets = [0, 24], sizes = [32, 24], strides = [1, 1]} : vector<32x96xf32> to vector<32x24xf32>
    %c31_i32 = arith.constant 31 : i32
    %10 = tpu.dynamic_rotate %9 by %c31_i32 dim 0 : vector<32x24xf32>, i32 -> vector<32x24xf32>
    %11 = arith.addf %8, %10 : vector<32x24xf32>
    %12 = vector.extract_strided_slice %7 {offsets = [0, 48], sizes = [32, 24], strides = [1, 1]} : vector<32x96xf32> to vector<32x24xf32>
    %c30_i32 = arith.constant 30 : i32
    %13 = tpu.dynamic_rotate %12 by %c30_i32 dim 0 : vector<32x24xf32>, i32 -> vector<32x24xf32>
    %14 = arith.addf %11, %13 : vector<32x24xf32>
    %15 = vector.extract_strided_slice %7 {offsets = [0, 72], sizes = [32, 24], strides = [1, 1]} : vector<32x96xf32> to vector<32x24xf32>
    %c29_i32 = arith.constant 29 : i32
    %16 = tpu.dynamic_rotate %15 by %c29_i32 dim 0 : vector<32x24xf32>, i32 -> vector<32x24xf32>
    %17 = arith.addf %14, %16 : vector<32x24xf32>
    %18 = vector.shape_cast %17 : vector<32x24xf32> to vector<2x16x24xf32>
    %19 = tpu.iota {dimensions = array<i32: 1>} : vector<2x16x24xi32>
    %20 = tpu.iota {dimensions = array<i32: 2>} : vector<2x16x24xi32>
    %c13_i32 = arith.constant 13 : i32
    %21 = vector.broadcast %c13_i32 : i32 to vector<2x16x24xi32>
    %c16_i32 = arith.constant 16 : i32
    %22 = vector.broadcast %c16_i32 : i32 to vector<2x16x24xi32>
    %23 = arith.cmpi slt, %20, %22 : vector<2x16x24xi32>
    %c14_i32 = arith.constant 14 : i32
    %24 = vector.broadcast %c14_i32 : i32 to vector<2x16x24xi32>
    %25 = arith.select %23, %24, %21 : vector<2x16x24xi1>, vector<2x16x24xi32>
    %c8_i32 = arith.constant 8 : i32
    %26 = vector.broadcast %c8_i32 : i32 to vector<2x16x24xi32>
    %27 = arith.cmpi slt, %20, %26 : vector<2x16x24xi32>
    %c15_i32 = arith.constant 15 : i32
    %28 = vector.broadcast %c15_i32 : i32 to vector<2x16x24xi32>
    %29 = arith.select %27, %28, %25 : vector<2x16x24xi1>, vector<2x16x24xi32>
    %30 = arith.cmpi slt, %19, %29 : vector<2x16x24xi32>
    %cst_3 = arith.constant -1.000000e+30 : f32
    %31 = vector.broadcast %cst_3 : f32 to vector<2x16x24xf32>
    %32 = arith.select %30, %18, %31 : vector<2x16x24xi1>, vector<2x16x24xf32>
    %cst_4 = arith.constant dense<0xFF800000> : vector<2x24xf32>
    %33 = vector.multi_reduction <maximumf>, %32, %cst_4 [1] : vector<2x16x24xf32> to vector<2x24xf32>
    %c0_5 = arith.constant 0 : index
    %c0_6 = arith.constant 0 : index
    %34 = vector.load %arg2[%c0_5, %c0_6] : memref<1x24xf32, #tpu.memory_space<vmem>>, vector<1x24xf32>
    %35 = vector.broadcast %34 : vector<1x24xf32> to vector<2x24xf32>
    %36 = arith.addf %33, %35 : vector<2x24xf32>
    %cst_7 = arith.constant 0.000000e+00 : f32
    %37 = vector.broadcast %cst_7 : f32 to vector<2x24xf32>
    %38 = arith.maximumf %36, %37 : vector<2x24xf32>
    %c0_8 = arith.constant 0 : index
    %c0_9 = arith.constant 0 : index
    %39 = vector.load %arg3[%c0_8, %c0_9] : memref<24x5xf32, #tpu.memory_space<vmem>>, vector<24x5xf32>
    %cst_10 = arith.constant dense<0.000000e+00> : vector<2x5xf32>
    %40 = tpu.matmul %38, %39, %cst_10 {dimension_numbers = #tpu.dot_dimension_numbers<[1], [0], [0], [1], [0, 0, 1, 1], [], []>} : vector<2x24xf32>, vector<24x5xf32>, vector<2x5xf32> -> vector<2x5xf32>
    %c0_11 = arith.constant 0 : index
    %c0_12 = arith.constant 0 : index
    %41 = vector.load %arg4[%c0_11, %c0_12] : memref<1x5xf32, #tpu.memory_space<vmem>>, vector<1x5xf32>
    %42 = vector.broadcast %41 : vector<1x5xf32> to vector<2x5xf32>
    %43 = arith.addf %40, %42 : vector<2x5xf32>
    %c0_13 = arith.constant 0 : index
    %c0_14 = arith.constant 0 : index
    %44 = vector.load %arg5[%c0_13, %c0_14] : memref<2x5xf32, #tpu.memory_space<vmem>>, vector<2x5xf32>
    tpu.vector_store %arg5[%c0_13, %c0_14], %43 {strides = array<i32>} : memref<2x5xf32, #tpu.memory_space<vmem>>, vector<2x5xf32>,
    return
  }
}

</mosaic_0001>

<bundles_post_ra>
// kernel: tpu_custom_call.1
= control target key start
LH: loop header
LB: loop body
LE: loop exit
PB: predicated region body
PF: predicated region fallthrough
CT: control target
= control target key end

     0   :  { %v491_v2 = vmov 0   ;;  %s637_s0 = inlined_call_operand.vmem [shape: s32[32,1], index: 0, kind: input, shape index: {}]   ;;  %s638_s1 = inlined_call_operand.vmem [shape: f32[50,96], index: 1, kind: input, shape index: {}]   ;;  %s639_s2 = inlined_call_operand.vmem [shape: f32[1,24], index: 2, kind: input, shape index: {}]   ;;  %s640_s3 = inlined_call_operand.vmem [shape: f32[24,5], index: 3, kind: input, shape index: {}]   ;;  %s641_s4 = inlined_call_operand.vmem [shape: f32[1,5], index: 4, kind: input, shape index: {}]   ;;  %s642_s5 = inlined_call_operand.hbm [shape: f32[2,5], index: 5, kind: output, shape index: {}]  }
   0x1   :  { %v21_v0 = vld [vmem:[%s637_s0] sm:$0xff]  ;;  %v23_v1 = vld [vmem:[%s637_s0 + $0x10] sm:$0xff]  ;;  %465 = vset.pattern.permute.xlu0 %v491_v2  ;;  %466 = vset.pattern.permute.xlu1 %v491_v2  ;;  %v22_v3 = vld [vmem:[%s637_s0 + $0x8] sm:$0xff] }
   0x2   :  { %v51_v4 = vld [vmem:[%s638_s1] sm:$0xff]  ;;  %v52_v5 = vld [vmem:[%s638_s1 + $0x8] sm:$0xff]  ;;  %28 = vperm.xlu0 %465, %v21_v0   ;;  %34 = vperm.xlu1 %466, %v23_v1   ;;  %v24_v6 = vld [vmem:[%s637_s0 + $0x18] sm:$0xff] }
   0x3   :  { %v441_v7 = vpack.c.bf16 %v52_v5, %v51_v4  ;;  %v53_v8 = vld [vmem:[%s638_s1 + $0x10] sm:$0xff]  ;;  %v54_v9 = vld [vmem:[%s638_s1 + $0x18] sm:$0xff]  ;;  %v55_v11 = vld [vmem:[%s638_s1 + $0x20] sm:$0xff] }
   0x4   :  { %v445_v10 = vpack.c.bf16 %v54_v9, %v53_v8  ;;  %v56_v12 = vld [vmem:[%s638_s1 + $0x28] sm:$0xff] }
   0x5   :  { %10 = vsyncpa [#allocation3], 0  ;;  %442 = vmatprep.subr.bf16.mxu0 %v441_v7  ;;  %v449_v13 = vpack.c.bf16 %v56_v12, %v55_v11  ;;  %v57_v14 = vld [vmem:[%s638_s1 + $0x30] sm:$0x3]  ;;  %vm71_vm0 = vcmask 1041408   ;;  %v25_v15 = vlaneseq  ;;  %vm58_vm1 = vcmask 408576  }
   0x6   :  { %444 = vmatpush3.bf16.msra.mxu0 %v441_v7  ;;  %31 = vperm.xlu0 %465, %v22_v3   ;;  %v492_v19 = vmov 0.0   ;;  %s493_s1 = smov 104   ;;  %s494_s14 = smov 80   ;;  %v282_v30 = vld [vmem:[%s640_s3] sm:$0xff]  ;;  %v283_v31 = vld [vmem:[%s640_s3 + $0x8] sm:$0xff]  ;;  %v496_v32 = vmov 0.0|0.0  }
   0x7   :  { %37 = vperm.xlu1 %466, %v24_v6   ;;  %446 = vmatprep.subr.bf16.mxu0 %v445_v10  ;;  %v563_v16 = vand.u32 127, %v25_v15  ;;  %s495_s15 = smov 56   ;;  %v454_v33 = vpack.c.bf16 %v283_v31, %v282_v30  ;;  %vm497_vm6 = vmmov 0   ;;  %v284_v34 = vld [vmem:[%s640_s3 + $0x10] sm:$0xff]  ;;  %v181_v39 = vshrl.u32 %v25_v15, 7  ;;  %s499_s25 = smov [#allocation2]  }
   0x8   :  { %453 = vmatprep.subr.bf16.mxu1 %v496_v32  ;;  %438 = vmatprep.mubr.msk.f32.mxu1 %vm497_vm6, %v492_v19  ;;  %v498_v51 = vmov 13   ;;  %vm252_vm13 = vcmask 195584   ;;  %vm295_vm14 = vcmask 1041409   ;;  %s377_s26 = sshll.u32 %s499_s25, 4  ;;  %vm369_vm15 = vcmask 33792   ;;  %s378_s26 = int_to_ptr.vmem [resolvable:$true] %s377_s26 }
   0x9   :  { %455 = vmatpush3.bf16.msra.mxu1 %v454_v33  ;;  %vm242_vm7 = vcmp.lt.s32.totalorder %v563_v16, 16  ;;  %vm182_vm8 = vcmp.lt.s32.totalorder %v181_v39, 7  ;;  %vm207_vm9 = vcmp.lt.s32.totalorder %v181_v39, 6  ;;  %vm244_vm10 = vcmp.lt.s32.totalorder %v563_v16, 8  ;;  %p472_p1 = scmp.lt.s32.totalorder %s378_s26, %s378_s26 }
   0xa   :  { %448 = vmatpush3.bf16.msra.mxu0 %v445_v10  ;;  %436 = vmatprep.subr.mxu1 %v492_v19  ;;  %v243_v52 = vsel %vm242_vm7, 14, %v498_v51  ;;  %vm232_vm11 = vcmp.lt.s32.totalorder %v181_v39, 5  ;;  %v241_v56 = vadd.s32 8, %v181_v39  ;;  %v395_v51 = vld [vmem:[%s641_s4] ss:$0 sm:$0xff] }
   0xb   :  { %450 = vmatprep.subr.bf16.mxu0 %v449_v13  ;;  %v245_v60 = vsel %vm244_vm10, 15, %v243_v52 }
   0xc   :  { %vm247_vm12 = vcmp.lt.s32.totalorder %v241_v56, %v245_v60 }
   0xd   :  { %437 = vmatpush3.msra.mxu1 %v284_v34 }
   0xe   :  { %452 = vmatpush3.bf16.msra.mxu0 %v449_v13 }
   0xf   :  { %424 = vmatprep.subr.msk.mxu0 %vm71_vm0, %v57_v14 }
  0x12   :  { %425 = vmatpush3.msk.msra.mxu0 %vm71_vm0, %v57_v14 }
  0x81   :  { %v29_v17 = vpop.permute.xlu0 %28  ;;  %v35_v18 = vpop.permute.xlu1 %34 }
  0x82   :  { %vm39_vm2 = vcmp.eq.s32.totalorder %v563_v16, %v29_v17  ;;  %vm41_vm3 = vcmp.eq.s32.totalorder %v563_v16, %v35_v18 }
  0x83   :  { %v385_v20 = vsel %vm39_vm2, 1.0, %v492_v19  ;;  %v387_v23 = vsel %vm41_vm3, 1.0, %v492_v19 }
  0x84   :  { %426 = vmatprep.mubr.msk.f32.mxu0 %vm58_vm1, %v385_v20 }
  0x85   :  { %v32_v21 = vpop.permute.xlu0 %31 }
  0x86   :  { %v38_v22 = vpop.permute.xlu1 %37  ;;  %vm40_vm4 = vcmp.eq.s32.totalorder %v563_v16, %v32_v21 }
  0x87   :  { %vm42_vm5 = vcmp.eq.s32.totalorder %v563_v16, %v38_v22  ;;  %v386_v24 = vsel %vm40_vm4, 1.0, %v492_v19 }
  0x88   :  { %427 = vmatmul.mubr.msk.f32.vlgmr.msra.gmra.mrb[0].mxu0 %vm58_vm1, %v386_v24  ;;  %v388_v25 = vsel %vm42_vm5, 1.0, %v492_v19 }
  0x89   :  { %429 = vmatprep.mubr.msk.f32.mxu0 %vm58_vm1, %v387_v23 }
  0x8c   :  { %430 = vmatmul.mubr.msk.f32.gmra.mrb[2].mxu0 %vm58_vm1, %v388_v25 }
 0x15b   :  { %v573_v26 = vpop.f32.mrb[0].mxu0 }
 0x15c   :  { %166 = vrot.lane.b32.xlu1 %v573_v26, %s493_s1  ;;  %v576_v27 = vpop.f32.mrb[1].mxu0 }
 0x15d   :  { %164 = vrot.lane.b32.xlu0 %v576_v27, %s493_s1 }
 0x15f   :  { %v431_v28 = vpop.f32.mrb[2].mxu0 }
 0x160   :  { %193 = vrot.lane.b32.xlu1 %v573_v26, %s494_s14  ;;  %v580_v29 = vpop.f32.mrb[3].mxu0 }
 0x161   :  { %191 = vrot.lane.b32.xlu0 %v576_v27, %s494_s14 }
 0x164   :  { %170 = vrot.lane.b32.xlu1 %v431_v28, %s493_s1 }
 0x165   :  { %216 = vrot.lane.b32.xlu0 %v576_v27, %s495_s15 }
 0x168   :  { %197 = vrot.lane.b32.xlu1 %v431_v28, %s494_s14 }
 0x169   :  { %168 = vrot.lane.b32.xlu0 %v580_v29, %s493_s1 }
 0x16c   :  { %222 = vrot.lane.b32.xlu1 %v431_v28, %s495_s15 }
 0x16d   :  { %195 = vrot.lane.b32.xlu0 %v580_v29, %s494_s14 }
 0x170   :  { %218 = vrot.lane.b32.xlu1 %v573_v26, %s495_s15 }
 0x171   :  { %220 = vrot.lane.b32.xlu0 %v580_v29, %s495_s15 }
 0x1ce   :  { %v167_v35 = vpop.permute.xlu1 %166 }
 0x1cf   :  { %v165_v36 = vpop.permute.xlu0 %164  ;;  %v177_v45 = vrot.slane %v167_v35, 1 }
 0x1d0   :  { %v176_v43 = vrot.slane %v165_v36, 1 }
 0x1d2   :  { %v194_v37 = vpop.permute.xlu1 %193  ;;  %v185_v58 = vsel %vm182_vm8, %v176_v43, %v177_v45 }
 0x1d3   :  { %v192_v38 = vpop.permute.xlu0 %191  ;;  %v204_v53 = vrot.slane %v194_v37, 2  ;;  %v187_v5 = vadd.f32 %v185_v58, %v576_v27 }
 0x1d4   :  { %v203_v46 = vrot.slane %v192_v38, 2 }
 0x1d6   :  { %v171_v40 = vpop.permute.xlu1 %170  ;;  %v210_v3 = vsel %vm207_vm9, %v203_v46, %v204_v53 }
 0x1d7   :  { %v179_v41 = vrot.slane %v171_v40, 1  ;;  %v217_v42 = vpop.permute.xlu0 %216  ;;  %v212_v14 = vadd.f32 %v210_v3, %v187_v5 }
 0x1d8   :  { %v228_v59 = vrot.slane %v217_v42, 3  ;;  %v394_v42 = vld [vmem:[%s639_s2] ss:$0 sm:$0xff]  ;;  %s467_s2 = scalar_lea.vmem %s378_s26, 32 }
 0x1d9   :  { %v186_v47 = vsel %vm182_vm8, %v179_v41, %v176_v43  ;;  %p468_p0 = scmp.ne.s32.totalorder %s378_s26, %s467_s2  ;;  %p473_p2 = scmp.lt.s32.totalorder %s467_s2, %s467_s2 }
 0x1da   :  { %v198_v44 = vpop.permute.xlu1 %197  ;;  %v190_v55 = vadd.f32 %v431_v28, %v186_v47 }
 0x1db   :  { %v206_v48 = vrot.slane %v198_v44, 2  ;;  %v169_v49 = vpop.permute.xlu0 %168  ;;  %p474_p3 = por %p473_p2, %p472_p1 }
 0x1dc   :  { %v178_v50 = vrot.slane %v169_v49, 1 }
 0x1dd   :  { %v211_v54 = vsel %vm207_vm9, %v206_v48, %v203_v46  ;;  %p475_p4 = pnand %p474_p3, %p468_p0 }
 0x1de   :  { %v223_v57 = vpop.permute.xlu1 %222  ;;  %v215_v63 = vadd.f32 %v211_v54, %v190_v55  ;;  %v183_v0 = vsel %vm182_vm8, %v178_v50, %v179_v41  ;;  %v184_v1 = vsel %vm182_vm8, %v177_v45, %v178_v50 }
 0x1df   :  { %v231_v61 = vrot.slane %v223_v57, 3  ;;  %v196_v62 = vpop.permute.xlu0 %195  ;;  %v188_v10 = vadd.f32 %v573_v26, %v184_v1  ;;  %v189_v11 = vadd.f32 %v183_v0, %v580_v29 }
 0x1e0   :  { %v205_v2 = vrot.slane %v196_v62, 2 }
 0x1e1   :  { %v236_v4 = vsel %vm232_vm11, %v231_v61, %v228_v59 }
 0x1e2   :  { %v240_v6 = vadd.f32 %v236_v4, %v215_v63  ;;  %v208_v7 = vsel %vm207_vm9, %v205_v2, %v206_v48  ;;  %v209_v8 = vsel %vm207_vm9, %v204_v53, %v205_v2  ;;  %v219_v9 = vpop.permute.xlu1 %218 }
 0x1e3   :  { %v229_v12 = vrot.slane %v219_v9, 3  ;;  %v221_v13 = vpop.permute.xlu0 %220  ;;  %v213_v16 = vadd.f32 %v209_v8, %v188_v10  ;;  %v214_v17 = vadd.f32 %v208_v7, %v189_v11 }
 0x1e4   :  { %v230_v15 = vrot.slane %v221_v13, 3  ;;  %v251_v19 = vsel %vm247_vm12, %v240_v6, -1e+30 }
 0x1e5   :  { %v235_v18 = vsel %vm232_vm11, %v228_v59, %v229_v12  ;;  %v263_v27 = vsel %vm252_vm13, %v251_v19, -inf }
 0x1e6   :  { %v237_v20 = vadd.f32 %v235_v18, %v212_v14  ;;  %v233_v21 = vsel %vm232_vm11, %v230_v15, %v231_v61  ;;  %v234_v22 = vsel %vm232_vm11, %v229_v12, %v230_v15 }
 0x1e7   :  { %v238_v23 = vadd.f32 %v234_v22, %v213_v16  ;;  %v239_v24 = vadd.f32 %v233_v21, %v214_v17 }
 0x1e8   :  { %v253_v28 = vsel %vm252_vm13, %v237_v20, -inf }
 0x1e9   :  { %v249_v25 = vsel %vm247_vm12, %v238_v23, -1e+30  ;;  %v262_v26 = vsel %vm252_vm13, %v239_v24, -inf }
 0x1ea   :  { %v254_v29 = vsel %vm252_vm13, %v249_v25, -inf  ;;  %v264_v30 = vmax.f32 %v262_v26, %v263_v27 }
 0x1eb   :  { %v255_v31 = vmax.f32 %v253_v28, %v254_v29 }
 0x1ec   :  { %v265_v32 = vrot.slane %v264_v30, 4 }
 0x1ed   :  { %v256_v33 = vrot.slane %v255_v31, 4 }
 0x1ee   :  { %v266_v34 = vmax.f32 %v264_v30, %v265_v32 }
 0x1ef   :  { %v257_v35 = vmax.f32 %v255_v31, %v256_v33 }
 0x1f0   :  { %v267_v36 = vrot.slane %v266_v34, 2 }
 0x1f1   :  { %v258_v37 = vrot.slane %v257_v35, 2 }
 0x1f2   :  { %v268_v38 = vmax.f32 %v266_v34, %v267_v36 }
 0x1f3   :  { %v259_v39 = vmax.f32 %v257_v35, %v258_v37 }
 0x1f4   :  { %v269_v40 = vrot.slane %v268_v38, 1 }
 0x1f5   :  { %v260_v41 = vrot.slane %v259_v39, 1 }
 0x1f6   :  { %v270_v43 = vmax.f32 %v268_v38, %v269_v40 }
 0x1f7   :  { %v261_v44 = vmax.f32 %v259_v39, %v260_v41 }
 0x1f8   :  { %v279_v45 = vadd.f32 %v394_v42, %v270_v43 }
 0x1f9   :  { %v278_v46 = vadd.f32 %v394_v42, %v261_v44 }
 0x1fa   :  { %v281_v47 = vmax.f32 %v279_v45, 0.0 }
 0x1fb   :  { %v280_v48 = vmax.f32 %v278_v46, 0.0 }
 0x1fc   :  { %v294_v49 = vrot.slane %v281_v47, 7 }
 0x1fe   :  { %v296_v50 = vsel %vm295_vm14, %v294_v49, %v280_v48 }
 0x1ff   :  { %439 = vmatmul.mubr.msk.f32.vlgmr.msra.gmra.mrb[0].mxu1 %vm252_vm13, %v296_v50 }
 0x2d2   :  { %v365_v52 = vpop.f32.mrb[0].mxu1 }
 0x2d3   :  { %v366_v53 = vadd.f32 %v395_v51, %v365_v52  ;;  %v440_v54 = vpop.f32.mrb[1].mxu1 }
 0x2d5   :  { %370 = vst.msk [vmem:[#allocation2] sm:$0x3] %vm369_vm15, %v366_v53 }
 0x2d6   :  { %478 = shalt.err (!%p475_p4)
}
 0x2d7   :  { %s479_s29 = scalar_lea.hbm %s642_s5, 32 }
 0x2d8   :  { %p480_p5 = scmp.ne.s32.totalorder %s642_s5, %s479_s29  ;;  %p483_p6 = scmp.lt.u32.totalorder %s479_s29, %s642_s5 }
 0x2da   :  { %p485_p7 = pnand %p483_p6, %p480_p5 }
 0x2dc   :  { %488 = shalt.err (!%p485_p7)
}
 0x2dd   :  { %380 = dma.vmem_to_hbm [thread:$0]  %s378_s26, 32, %s642_s5, [#allocation3]  }
 0x2de   :  { %489 = dma.done.wait [#allocation3], 32  }
 0x2df   :  { %490 = vsyncadd [#allocation3], 4294967264 }
 0x2e0   :  { %384 = vsyncpa [#allocation3], 1 }

</bundles_post_ra>
